<compile_context>
chip_gen: v7x
topology: tpu7x:2x2x1
jax: 0.10.0
libtpu: 0.0.40
codegen_flags: <defaults>
</compile_context>

<pallas_src>
import functools

import jax
import jax.numpy as jnp
from jax.experimental import pallas as pl
from jax.experimental.pallas import tpu as pltpu


def _round_up(x, m):
    return ((x + m - 1) // m) * m


def _conv_kernel(x_ref, w_ref, shift_ref, o_ref, *, K, Ho, Nb, apply_relu):
    # x_ref:     (Nb, Hp, WpCp)  bf16  padded images, (W, C) packed on the lane axis
    # w_ref:     (K, WpCp, L)    bf16  block-Toeplitz weights (BN scale folded in)
    # shift_ref: (1, L)          f32   conv-bias + BN shift, tiled over Wo
    # o_ref:     (Nb, Ho, L)     f32   lane-dense output slab (L multiple of 128)
    L = o_ref.shape[2]
    WpCp = x_ref.shape[2]
    M = Nb * Ho
    # Accumulator initialized from the shift (one hoisted broadcast, no epilogue add).
    acc = jnp.broadcast_to(shift_ref[...], (M, L)).astype(jnp.float32)
    for kh in range(K):                                       # static unroll, row taps
        lhs = x_ref[:, kh:kh + Ho, :].reshape(M, WpCp)        # (Nb*Ho, WpCp) bf16
        acc = acc + jnp.dot(lhs, w_ref[kh],
                            preferred_element_type=jnp.float32)
    if apply_relu:
        acc = jnp.maximum(acc, 0.0)
    o_ref[...] = acc.reshape(Nb, Ho, L)                       # full-lane unmasked store


def _auto_images_per_block(N, Ho):
    """Pick Nb: even grid >= 2 on v7x (2 TCs), fat grid-of-1 steps on v5e/v6e."""
    try:
        kind = jax.devices()[0].device_kind.lower()
    except Exception:
        kind = ""
    two_tc = "v7" in kind
    best = 1
    for d in range(1, N + 1):
        if N % d:
            continue
        if d * Ho > 512:                 # bound per-step M rows / VMEM
            continue
        grid = N // d
        if two_tc and N > 1 and (grid < 2 or grid % 2 != 0):
            continue                     # keep both v7x TensorCores busy & balanced
        best = d
    return best


def basic_conv_forward(x_nchw, weight_oihw, bias, *, kernel_size, stride=1,
                       padding=0, relu=True, bn_params=None, up_size=0,
                       images_per_block=None):
    """Forward of BasicConv (stride=1, dilation=1, groups=1)."""
    assert stride == 1, "stride=1 supported (the BasicConv default)"
    N, Cin, H, W = x_nchw.shape
    Cout = weight_oihw.shape[0]
    K = kernel_size
    Ho = H + 2 * padding - K + 1
    Wo = W + 2 * padding - K + 1
    Hp, Wp = H + 2 * padding, W + 2 * padding
    WpC = Wp * Cin
    WpCp = _round_up(WpC, 128)              # lane-aligned contraction width
    WoC = Wo * Cout
    L = _round_up(WoC, 128)                 # lane-dense output slab width

    if images_per_block is None:
        Nb = _auto_images_per_block(N, Ho)
    else:
        Nb = images_per_block
    assert N % Nb == 0, "images_per_block must divide the batch"

    # ---- glue: layout conversion, padding, weight transform (plain JAX, one-time) ----
    x_nhwc = jnp.transpose(x_nchw, (0, 2, 3, 1)).astype(jnp.float32)
    x_pad = jnp.pad(x_nhwc, ((0, 0), (padding, padding), (padding, padding), (0, 0)))
    x2d = x_pad.reshape(N, Hp, WpC)
    # Pad contraction to a lane multiple and cast to bf16 once (halves input DMA bytes).
    x2d = jnp.pad(x2d, ((0, 0), (0, 0), (0, WpCp - WpC))).astype(jnp.bfloat16)

    if bias is None:
        bias = jnp.zeros((Cout,), jnp.float32)
    if bn_params is not None:
        gamma, beta, mean, var, eps = bn_params
        inv_std = 1.0 / jnp.sqrt(var + eps)
        scale = gamma * inv_std
        shift = beta + (bias - mean) * scale
    else:
        scale = jnp.ones((Cout,), jnp.float32)
        shift = bias.astype(jnp.float32)

    # Fold BN scale into the weights -> kernel epilogue is just the optional ReLU.
    w_hwio = jnp.transpose(weight_oihw, (2, 3, 1, 0)).astype(jnp.float32)  # (K,K,Cin,Cout)
    w_hwio = w_hwio * scale[None, None, None, :]

    # Block-Toeplitz expansion over the width axis: per kh tap, a (WpCp, L) weight so
    # out[h, w*Cout + c] = sum_kh (x2d[h+kh, :] @ w_toe[kh])[w*Cout + c].
    toe = jnp.zeros((K, Wp, Cin, Wo, Cout), jnp.float32)
    for kw in range(K):
        sel = jnp.eye(Wp, Wo, k=-kw, dtype=jnp.float32)   # sel[wp, w] = (wp == w + kw)
        toe = toe + jnp.einsum('kic,pw->kpiwc', w_hwio[:, kw], sel)
    w_toe = toe.reshape(K, WpC, WoC)
    w_toe = jnp.pad(w_toe, ((0, 0), (0, WpCp - WpC), (0, L - WoC))).astype(jnp.bfloat16)

    shift_slab = jnp.pad(jnp.tile(shift.astype(jnp.float32), Wo),
                         (0, L - WoC)).reshape(1, L)

    # ---- Pallas kernel: parallel grid over batch, Nb images folded into matmul M ----
    kernel = functools.partial(_conv_kernel, K=K, Ho=Ho, Nb=Nb, apply_relu=relu)

    # Size the scoped-VMEM limit from the actual block footprint (conservatively
    # assuming double buffers everywhere), capped at v7x's 64 MiB per TensorCore.
    est = (2 * Nb * Hp * WpCp * 2          # input block, bf16
           + 2 * K * WpCp * L * 2          # weight, bf16
           + 2 * L * 4                     # shift
           + 2 * Nb * Ho * L * 4)          # output block, f32
    vmem_limit = int(min(64 * 2**20, max(4 * est, 32 * 2**20)))

    def make_call(single_buffer_invariants):
        inv = {"pipeline_mode": pl.Buffered(1)} if single_buffer_invariants else {}
        return pl.pallas_call(
            kernel,
            out_shape=jax.ShapeDtypeStruct((N, Ho, L), jnp.float32),
            grid_spec=pltpu.PrefetchScalarGridSpec(
                num_scalar_prefetch=0,
                grid=(N // Nb,),
                in_specs=[
                    pl.BlockSpec((Nb, Hp, WpCp), lambda i: (i, 0, 0)),
                    pl.BlockSpec((K, WpCp, L), lambda i: (0, 0, 0), **inv),
                    pl.BlockSpec((1, L), lambda i: (0, 0), **inv),
                ],
                out_specs=pl.BlockSpec((Nb, Ho, L), lambda i: (i, 0, 0)),
            ),
            compiler_params=pltpu.CompilerParams(
                dimension_semantics=("parallel",),
                vmem_limit_bytes=vmem_limit),
        )

    try:
        # Grid-invariant operands single-buffered (weight dominates VMEM at real shapes).
        out_slab = make_call(True)(x2d, w_toe, shift_slab)
    except Exception:
        # Fallback: default double-buffering if Buffered(1) is rejected by this jax build.
        out_slab = make_call(False)(x2d, w_toe, shift_slab)

    out_nhwc = out_slab[:, :, :WoC].reshape(N, Ho, Wo, Cout)
    out_nchw = jnp.transpose(out_nhwc, (0, 3, 1, 2))

    if up_size > 0:
        # TODO(synk): bilinear upsample (nn.Upsample, align_corners=False) stays in JAX
        # glue; antialias=False matches F.interpolate on downscale as well.
        out_nchw = jax.image.resize(
            out_nchw, (N, Cout, up_size, up_size), method="bilinear", antialias=False)
    return out_nchw


if __name__ == "__main__":
    key = jax.random.PRNGKey(0)
    k_x, k_w, k_b = jax.random.split(key, 3)

    # BasicConv(in_channels=4, out_channels=8, kernel_size=3, padding=1)
    N, Cin, H, W = 2, 4, 16, 16
    Cout, K, pad = 8, 3, 1

    x = jax.random.normal(k_x, (N, Cin, H, W), jnp.float32)
    weight = jax.random.normal(k_w, (Cout, Cin, K, K), jnp.float32) * 0.1
    bias = jax.random.normal(k_b, (Cout,), jnp.float32) * 0.1

    out = basic_conv_forward(x, weight, bias, kernel_size=K, stride=1,
                             padding=pad, relu=True, bn_params=None, up_size=0)
    out = jax.block_until_ready(out)

    # Reference in the same precision regime (bf16 operands, f32 accumulation).
    ref = jax.lax.conv_general_dilated(
        x.astype(jnp.bfloat16), weight.astype(jnp.bfloat16),
        window_strides=(1, 1), padding=((pad, pad), (pad, pad)),
        dimension_numbers=("NCHW", "OIHW", "NCHW"),
        preferred_element_type=jnp.float32)
    ref = jnp.maximum(ref + bias[None, :, None, None], 0.0)

    assert out.shape == (N, Cout, H, W), out.shape
    assert jnp.allclose(out, ref, atol=1e-3, rtol=1e-3), "mismatch vs reference"

    print("KERNEL_OK")
</pallas_src>

<mosaic_0001>
module attributes {stable_mosaic.version = 11 : i64} {
  func.func @_conv_kernel(%arg0: i32, %arg1: memref<2x18x128xbf16, #tpu.memory_space<vmem>>, %arg2: memref<3x128x128xbf16, #tpu.memory_space<vmem>>, %arg3: memref<1x128xf32, #tpu.memory_space<vmem>>, %arg4: memref<2x16x128xf32, #tpu.memory_space<vmem>>) attributes {dimension_semantics = [#tpu.dimension_semantics<parallel>], iteration_bounds = array<i64: 1>, scalar_prefetch = 0 : i64, scratch_operands = 0 : i64, tpu.core_type = #tpu.core_type<tc>, window_params = [{transform_indices = @transform_0, window_bounds = array<i64: 2, 18, 128>}, {pipeline_mode = #tpu.pipeline_mode<synchronous>, transform_indices = @transform_1, window_bounds = array<i64: 3, 128, 128>}, {pipeline_mode = #tpu.pipeline_mode<synchronous>, transform_indices = @transform_2, window_bounds = array<i64: 1, 128>}, {transform_indices = @transform_3, window_bounds = array<i64: 2, 16, 128>}]} {
    %c0 = arith.constant 0 : index
    %c0_0 = arith.constant 0 : index
    %0 = vector.load %arg3[%c0, %c0_0] : memref<1x128xf32, #tpu.memory_space<vmem>>, vector<1x128xf32>
    %1 = vector.shape_cast %0 : vector<1x128xf32> to vector<1x128xf32>
    %2 = vector.broadcast %1 : vector<1x128xf32> to vector<32x128xf32>
    %c0_1 = arith.constant 0 : index
    %c0_2 = arith.constant 0 : index
    %c0_3 = arith.constant 0 : index
    %3 = vector.load %arg1[%c0_1, %c0_2, %c0_3] : memref<2x18x128xbf16, #tpu.memory_space<vmem>>, vector<2x16x128xbf16>
    %4 = vector.shape_cast %3 : vector<2x16x128xbf16> to vector<32x128xbf16>
    %c0_4 = arith.constant 0 : index
    %c0_5 = arith.constant 0 : index
    %c0_6 = arith.constant 0 : index
    %5 = vector.load %arg2[%c0_4, %c0_5, %c0_6] : memref<3x128x128xbf16, #tpu.memory_space<vmem>>, vector<1x128x128xbf16>
    %6 = vector.shape_cast %5 : vector<1x128x128xbf16> to vector<128x128xbf16>
    %cst = arith.constant dense<0.000000e+00> : vector<32x128xf32>
    %7 = tpu.matmul %4, %6, %cst {dimension_numbers = #tpu.dot_dimension_numbers<[1], [0], [0], [1], [0, 0, 1, 1], [], []>} : vector<32x128xbf16>, vector<128x128xbf16>, vector<32x128xf32> -> vector<32x128xf32>
    %8 = arith.addf %2, %7 : vector<32x128xf32>
    %c0_7 = arith.constant 0 : index
    %c1 = arith.constant 1 : index
    %c0_8 = arith.constant 0 : index
    %9 = vector.load %arg1[%c0_7, %c1, %c0_8] : memref<2x18x128xbf16, #tpu.memory_space<vmem>>, vector<2x16x128xbf16>
    %10 = vector.shape_cast %9 : vector<2x16x128xbf16> to vector<32x128xbf16>
    %c1_9 = arith.constant 1 : index
    %c0_10 = arith.constant 0 : index
    %c0_11 = arith.constant 0 : index
    %11 = vector.load %arg2[%c1_9, %c0_10, %c0_11] : memref<3x128x128xbf16, #tpu.memory_space<vmem>>, vector<1x128x128xbf16>
    %12 = vector.shape_cast %11 : vector<1x128x128xbf16> to vector<128x128xbf16>
    %cst_12 = arith.constant dense<0.000000e+00> : vector<32x128xf32>
    %13 = tpu.matmul %10, %12, %cst_12 {dimension_numbers = #tpu.dot_dimension_numbers<[1], [0], [0], [1], [0, 0, 1, 1], [], []>} : vector<32x128xbf16>, vector<128x128xbf16>, vector<32x128xf32> -> vector<32x128xf32>
    %14 = arith.addf %8, %13 : vector<32x128xf32>
    %c0_13 = arith.constant 0 : index
    %c2 = arith.constant 2 : index
    %c0_14 = arith.constant 0 : index
    %15 = vector.load %arg1[%c0_13, %c2, %c0_14] : memref<2x18x128xbf16, #tpu.memory_space<vmem>>, vector<2x16x128xbf16>
    %16 = vector.shape_cast %15 : vector<2x16x128xbf16> to vector<32x128xbf16>
    %c2_15 = arith.constant 2 : index
    %c0_16 = arith.constant 0 : index
    %c0_17 = arith.constant 0 : index
    %17 = vector.load %arg2[%c2_15, %c0_16, %c0_17] : memref<3x128x128xbf16, #tpu.memory_space<vmem>>, vector<1x128x128xbf16>
    %18 = vector.shape_cast %17 : vector<1x128x128xbf16> to vector<128x128xbf16>
    %cst_18 = arith.constant dense<0.000000e+00> : vector<32x128xf32>
    %19 = tpu.matmul %16, %18, %cst_18 {dimension_numbers = #tpu.dot_dimension_numbers<[1], [0], [0], [1], [0, 0, 1, 1], [], []>} : vector<32x128xbf16>, vector<128x128xbf16>, vector<32x128xf32> -> vector<32x128xf32>
    %20 = arith.addf %14, %19 : vector<32x128xf32>
    %cst_19 = arith.constant 0.000000e+00 : f32
    %21 = vector.broadcast %cst_19 : f32 to vector<32x128xf32>
    %22 = arith.maximumf %20, %21 : vector<32x128xf32>
    %23 = vector.shape_cast %22 : vector<32x128xf32> to vector<2x16x128xf32>
    %c0_20 = arith.constant 0 : index
    %c0_21 = arith.constant 0 : index
    %c0_22 = arith.constant 0 : index
    %24 = vector.load %arg4[%c0_20, %c0_21, %c0_22] : memref<2x16x128xf32, #tpu.memory_space<vmem>>, vector<2x16x128xf32>
    tpu.vector_store %arg4[%c0_20, %c0_21, %c0_22], %23 {strides = array<i32>} : memref<2x16x128xf32, #tpu.memory_space<vmem>>, vector<2x16x128xf32>,
    return
  }
  func.func @transform_0(%arg0: i32) -> (i32, i32, i32) {
    %c0_i32 = arith.constant 0 : i32
    %c0_i32_0 = arith.constant 0 : i32
    %c0_i32_1 = arith.constant 0 : i32
    return %arg0, %c0_i32, %c0_i32_0 : i32, i32, i32
  }
  func.func @transform_1(%arg0: i32) -> (i32, i32, i32) {
    %c0_i32 = arith.constant 0 : i32
    %c0_i32_0 = arith.constant 0 : i32
    %c0_i32_1 = arith.constant 0 : i32
    %c0_i32_2 = arith.constant 0 : i32
    return %c0_i32, %c0_i32_0, %c0_i32_1 : i32, i32, i32
  }
  func.func @transform_2(%arg0: i32) -> (i32, i32) {
    %c0_i32 = arith.constant 0 : i32
    %c0_i32_0 = arith.constant 0 : i32
    %c0_i32_1 = arith.constant 0 : i32
    return %c0_i32, %c0_i32_0 : i32, i32
  }
  func.func @transform_3(%arg0: i32) -> (i32, i32, i32) {
    %c0_i32 = arith.constant 0 : i32
    %c0_i32_0 = arith.constant 0 : i32
    %c0_i32_1 = arith.constant 0 : i32
    return %arg0, %c0_i32, %c0_i32_0 : i32, i32, i32
  }
}

module attributes {stable_mosaic.version = 11 : i64} {
  func.func @_conv_kernel(%arg0: i32, %arg1: memref<2x18x128xbf16, #tpu.memory_space<vmem>>, %arg2: memref<3x128x128xbf16, #tpu.memory_space<vmem>>, %arg3: memref<1x128xf32, #tpu.memory_space<vmem>>, %arg4: memref<2x16x128xf32, #tpu.memory_space<vmem>>) attributes {dimension_semantics = [#tpu.dimension_semantics<parallel>], iteration_bounds = array<i64: 1>, scalar_prefetch = 0 : i64, scratch_operands = 0 : i64, tpu.core_type = #tpu.core_type<tc>, window_params = [{transform_indices = @transform_0, window_bounds = array<i64: 2, 18, 128>}, {pipeline_mode = #tpu.pipeline_mode<synchronous>, transform_indices = @transform_1, window_bounds = array<i64: 3, 128, 128>}, {pipeline_mode = #tpu.pipeline_mode<synchronous>, transform_indices = @transform_2, window_bounds = array<i64: 1, 128>}, {transform_indices = @transform_3, window_bounds = array<i64: 2, 16, 128>}]} {
    %c0 = arith.constant 0 : index
    %c0_0 = arith.constant 0 : index
    %0 = vector.load %arg3[%c0, %c0_0] : memref<1x128xf32, #tpu.memory_space<vmem>>, vector<1x128xf32>
    %1 = vector.shape_cast %0 : vector<1x128xf32> to vector<1x128xf32>
    %2 = vector.broadcast %1 : vector<1x128xf32> to vector<32x128xf32>
    %c0_1 = arith.constant 0 : index
    %c0_2 = arith.constant 0 : index
    %c0_3 = arith.constant 0 : index
    %3 = vector.load %arg1[%c0_1, %c0_2, %c0_3] : memref<2x18x128xbf16, #tpu.memory_space<vmem>>, vector<2x16x128xbf16>
    %4 = vector.shape_cast %3 : vector<2x16x128xbf16> to vector<32x128xbf16>
    %c0_4 = arith.constant 0 : index
    %c0_5 = arith.constant 0 : index
    %c0_6 = arith.constant 0 : index
    %5 = vector.load %arg2[%c0_4, %c0_5, %c0_6] : memref<3x128x128xbf16, #tpu.memory_space<vmem>>, vector<1x128x128xbf16>
    %6 = vector.shape_cast %5 : vector<1x128x128xbf16> to vector<128x128xbf16>
    %cst = arith.constant dense<0.000000e+00> : vector<32x128xf32>
    %7 = tpu.matmul %4, %6, %cst {dimension_numbers = #tpu.dot_dimension_numbers<[1], [0], [0], [1], [0, 0, 1, 1], [], []>} : vector<32x128xbf16>, vector<128x128xbf16>, vector<32x128xf32> -> vector<32x128xf32>
    %8 = arith.addf %2, %7 : vector<32x128xf32>
    %c0_7 = arith.constant 0 : index
    %c1 = arith.constant 1 : index
    %c0_8 = arith.constant 0 : index
    %9 = vector.load %arg1[%c0_7, %c1, %c0_8] : memref<2x18x128xbf16, #tpu.memory_space<vmem>>, vector<2x16x128xbf16>
    %10 = vector.shape_cast %9 : vector<2x16x128xbf16> to vector<32x128xbf16>
    %c1_9 = arith.constant 1 : index
    %c0_10 = arith.constant 0 : index
    %c0_11 = arith.constant 0 : index
    %11 = vector.load %arg2[%c1_9, %c0_10, %c0_11] : memref<3x128x128xbf16, #tpu.memory_space<vmem>>, vector<1x128x128xbf16>
    %12 = vector.shape_cast %11 : vector<1x128x128xbf16> to vector<128x128xbf16>
    %cst_12 = arith.constant dense<0.000000e+00> : vector<32x128xf32>
    %13 = tpu.matmul %10, %12, %cst_12 {dimension_numbers = #tpu.dot_dimension_numbers<[1], [0], [0], [1], [0, 0, 1, 1], [], []>} : vector<32x128xbf16>, vector<128x128xbf16>, vector<32x128xf32> -> vector<32x128xf32>
    %14 = arith.addf %8, %13 : vector<32x128xf32>
    %c0_13 = arith.constant 0 : index
    %c2 = arith.constant 2 : index
    %c0_14 = arith.constant 0 : index
    %15 = vector.load %arg1[%c0_13, %c2, %c0_14] : memref<2x18x128xbf16, #tpu.memory_space<vmem>>, vector<2x16x128xbf16>
    %16 = vector.shape_cast %15 : vector<2x16x128xbf16> to vector<32x128xbf16>
    %c2_15 = arith.constant 2 : index
    %c0_16 = arith.constant 0 : index
    %c0_17 = arith.constant 0 : index
    %17 = vector.load %arg2[%c2_15, %c0_16, %c0_17] : memref<3x128x128xbf16, #tpu.memory_space<vmem>>, vector<1x128x128xbf16>
    %18 = vector.shape_cast %17 : vector<1x128x128xbf16> to vector<128x128xbf16>
    %cst_18 = arith.constant dense<0.000000e+00> : vector<32x128xf32>
    %19 = tpu.matmul %16, %18, %cst_18 {dimension_numbers = #tpu.dot_dimension_numbers<[1], [0], [0], [1], [0, 0, 1, 1], [], []>} : vector<32x128xbf16>, vector<128x128xbf16>, vector<32x128xf32> -> vector<32x128xf32>
    %20 = arith.addf %14, %19 : vector<32x128xf32>
    %cst_19 = arith.constant 0.000000e+00 : f32
    %21 = vector.broadcast %cst_19 : f32 to vector<32x128xf32>
    %22 = arith.maximumf %20, %21 : vector<32x128xf32>
    %23 = vector.shape_cast %22 : vector<32x128xf32> to vector<2x16x128xf32>
    %c0_20 = arith.constant 0 : index
    %c0_21 = arith.constant 0 : index
    %c0_22 = arith.constant 0 : index
    %24 = vector.load %arg4[%c0_20, %c0_21, %c0_22] : memref<2x16x128xf32, #tpu.memory_space<vmem>>, vector<2x16x128xf32>
    tpu.vector_store %arg4[%c0_20, %c0_21, %c0_22], %23 {strides = array<i32>} : memref<2x16x128xf32, #tpu.memory_space<vmem>>, vector<2x16x128xf32>,
    return
  }
  func.func @transform_0(%arg0: i32) -> (i32, i32, i32) {
    %c0_i32 = arith.constant 0 : i32
    %c0_i32_0 = arith.constant 0 : i32
    %c0_i32_1 = arith.constant 0 : i32
    return %arg0, %c0_i32, %c0_i32_0 : i32, i32, i32
  }
  func.func @transform_1(%arg0: i32) -> (i32, i32, i32) {
    %c0_i32 = arith.constant 0 : i32
    %c0_i32_0 = arith.constant 0 : i32
    %c0_i32_1 = arith.constant 0 : i32
    %c0_i32_2 = arith.constant 0 : i32
    return %c0_i32, %c0_i32_0, %c0_i32_1 : i32, i32, i32
  }
  func.func @transform_2(%arg0: i32) -> (i32, i32) {
    %c0_i32 = arith.constant 0 : i32
    %c0_i32_0 = arith.constant 0 : i32
    %c0_i32_1 = arith.constant 0 : i32
    return %c0_i32, %c0_i32_0 : i32, i32
  }
  func.func @transform_3(%arg0: i32) -> (i32, i32, i32) {
    %c0_i32 = arith.constant 0 : i32
    %c0_i32_0 = arith.constant 0 : i32
    %c0_i32_1 = arith.constant 0 : i32
    return %arg0, %c0_i32, %c0_i32_0 : i32, i32, i32
  }
}

</mosaic_0001>

<bundles_post_ra>
// kernel: tpu_custom_call.1
= control target key start
LH: loop header
LB: loop body
LE: loop exit
PB: predicated region body
PF: predicated region fallthrough
CT: control target
= control target key end

     0   :  { %8 = vsyncpa [#allocation3], 0  ;;  %s872_s0 = inlined_call_operand.vmem [shape: bf16[2,18,128], index: 0, kind: input, shape index: {}]   ;;  %s873_s1 = inlined_call_operand.hbm [shape: bf16[3,128,128], index: 1, kind: input, shape index: {}]   ;;  %s874_s2 = inlined_call_operand.vmem [shape: f32[1,128], index: 2, kind: input, shape index: {}]   ;;  %s875_s3 = inlined_call_operand.hbm [shape: f32[2,16,128], index: 3, kind: output, shape index: {}]  }
   0x1   :  { %9 = vsyncpa [#allocation4], 0  ;;  %s744_s12 = smov [#allocation2]   ;;  %s696_s16 = scalar_lea.hbm %s873_s1, 3072 }
   0x2   :  { %s17_s13 = sshll.u32 %s744_s12, 4  ;;  %p697_p0 = scmp.ne.s32.totalorder %s873_s1, %s696_s16  ;;  %s18_s13 = int_to_ptr.vmem [resolvable:$true] %s17_s13 }
   0x3   :  { %p700_p1 = scmp.lt.u32.totalorder %s696_s16, %s873_s1 }
   0x5   :  { %p702_p2 = pnand %p700_p1, %p697_p0 }
   0x7   :  { %705 = shalt.err (!%p702_p2)
}
   0x8   :  { %s706_s21 = scalar_lea.vmem %s18_s13, 3072  ;;  %p711_p4 = scmp.lt.s32.totalorder %s18_s13, %s18_s13 }
   0x9   :  { %p707_p3 = scmp.ne.s32.totalorder %s18_s13, %s706_s21  ;;  %p712_p5 = scmp.lt.s32.totalorder %s706_s21, %s706_s21 }
   0xb   :  { %p713_p6 = por %p712_p5, %p711_p4 }
   0xd   :  { %p714_p7 = pnand %p713_p6, %p707_p3 }
   0xf   :  { %717 = shalt.err (!%p714_p7)
}
  0x10   :  { %s745_s22 = smov 64   ;;  %s746_s23 = smov 4  }
  0x11   :  { %23 = dma.hbm_to_vmem [thread:$0]  %s873_s1, 3072, %s18_s13, [#allocation3], %s745_s22, %s745_s22, %s746_s23  }
  0x12   :  { %740 = dma.done.wait [#allocation3], 3072  }
  0x13   :  { %741 = vsyncadd [#allocation3], 4294964224  ;;  %v670_v0 = vld [vmem:[#allocation2 + $0x40] sm:$0xff]   ;;  %v671_v1 = vld [vmem:[#allocation2 + $0x48] sm:$0xff]   ;;  %vm176_vm0 = vsmask.f32 3328 }
  0x14   :  { %612 = vmatprep.subr.bf16.mxu0 %v670_v0  ;;  %v672_v2 = vld [vmem:[#allocation2 + $0x50] sm:$0xff]   ;;  %vm177_vm1 = vsmask.f32 7440  ;;  %v677_v3 = vld [vmem:[#allocation2] sm:$0xff]   ;;  %v673_v4 = vld [vmem:[#allocation2 + $0x58] sm:$0xff]   ;;  %vm361_vm3 = vcmask 1042432  }
  0x15   :  { %613 = vmatpush3.bf16.msra.mxu0 %v670_v0  ;;  %592 = vmatprep.subr.bf16.mxu1 %v677_v3  ;;  %v679_v5 = vld [vmem:[#allocation2 + $0x8] sm:$0xff]   ;;  %v793_v8 = vld [vmem:[%s872_s0 + $0x8] sm:$0x1]  ;;  %v674_v13 = vld [vmem:[#allocation2 + $0x60] sm:$0xff]   ;;  %vm362_vm4 = vcmask 1046532   ;;  %s747_s19 = smov [#allocation5]  }
  0x16   :  { %614 = vmatprep.subr.bf16.mxu0 %v671_v1  ;;  %593 = vmatpush3.bf16.msra.mxu1 %v677_v3  ;;  %v170_v6 = vld [vmem:[%s872_s0] sm:$0xf]  ;;  %v788_v7 = vld [vmem:[%s872_s0 + $0x4] sm:$0xf]  ;;  %v199_v14 = vshll.u32 %v793_v8, 16  ;;  %v681_v15 = vld [vmem:[#allocation2 + $0x10] sm:$0xff]  }
  0x17   :  { %594 = vmatprep.subr.bf16.mxu1 %v679_v5  ;;  %v180_v9 = vshrl.u32 %v170_v6, 16  ;;  %v183_v10 = vshll.u32 %v170_v6, 16  ;;  %v189_v11 = vshll.u32 %v788_v7, 16  ;;  %v193_v12 = vshrl.u32 %v788_v7, 16  ;;  %v173_v20 = vld [vmem:[%s872_s0 + $0xc] sm:$0xf]  ;;  %vm814_vm2 = vmor %vm176_vm0, %vm177_vm1 }
  0x18   :  { %v201_v21 = vrot.slane %v199_v14, 5  ;;  %v804_v22 = vld [vmem:[%s872_s0 + $0x10] sm:$0xf]  ;;  %v809_v23 = vld [vmem:[%s872_s0 + $0x14] sm:$0x1]  ;;  %v204_v24 = vshrl.u32 %v173_v20, 16  ;;  %vm826_vm5 = vmor %vm361_vm3, %vm362_vm4 }
  0x19   :  { %615 = vmatpush3.bf16.msra.mxu0 %v671_v1  ;;  %v182_v16 = vrot.slane %v180_v9, 4  ;;  %v185_v17 = vrot.slane %v183_v10, 5  ;;  %v191_v18 = vrot.slane %v189_v11, 5  ;;  %v195_v19 = vrot.slane %v193_v12, 4  ;;  %v675_v29 = vld [vmem:[#allocation2 + $0x68] sm:$0xff]   ;;  %v683_v39 = vld [vmem:[#allocation2 + $0x18] sm:$0xff]  }
  0x1a   :  { %616 = vmatprep.subr.bf16.mxu0 %v672_v2  ;;  %595 = vmatpush3.bf16.msra.mxu1 %v679_v5  ;;  %v207_v27 = vshll.u32 %v173_v20, 16  ;;  %v213_v28 = vshll.u32 %v804_v22, 16  ;;  %v206_v31 = vrot.slane %v204_v24, 4  ;;  %v217_v32 = vshrl.u32 %v804_v22, 16  ;;  %v676_v43 = vld [vmem:[#allocation2 + $0x70] sm:$0xff]   ;;  %v685_v46 = vld [vmem:[#allocation2 + $0x20] sm:$0xff]  }
  0x1b   :  { %v186_v25 = vor.u32 %v185_v17, %v182_v16  ;;  %v196_v26 = vor.u32 %v195_v19, %v191_v18  ;;  %596 = vmatprep.subr.bf16.mxu1 %v681_v15  ;;  %v223_v38 = vshll.u32 %v809_v23, 16  ;;  %v687_v50 = vld [vmem:[#allocation2 + $0x28] sm:$0xff]   ;;  %v678_v51 = vld [vmem:[#allocation2 + $0x78] sm:$0xff]   ;;  %v366_v52 = vrot.slane %v788_v7, 5  ;;  %v689_v57 = vld [vmem:[#allocation2 + $0x30] sm:$0xff]   ;;  %s517_s20 = sshll.u32 %s747_s19, 4  ;;  %s518_s20 = int_to_ptr.vmem [resolvable:$true] %s517_s20 }
  0x1c   :  { %v209_v35 = vrot.slane %v207_v27, 5  ;;  %v215_v36 = vrot.slane %v213_v28, 5  ;;  %v219_v37 = vrot.slane %v217_v32, 4  ;;  %v369_v54 = vrot.slane %v793_v8, 5  ;;  %v680_v58 = vld [vmem:[#allocation2 + $0x80] sm:$0xff]   ;;  %v693_v60 = vld [vmem:[%s872_s0] sm:$0xff]   ;;  %p723_p9 = scmp.lt.s32.totalorder %s518_s20, %s518_s20 }
  0x1d   :  { %617 = vmatpush3.bf16.msra.mxu0 %v672_v2  ;;  %v187_v33 = vrot.slane %v186_v25, 4  ;;  %v197_v34 = vrot.slane %v196_v26, 4  ;;  %v225_v48 = vrot.slane %v223_v38, 5  ;;  %v368_v59 = vrot.slane %v366_v52, 4  ;;  %v691_v62 = vld [vmem:[#allocation2 + $0x38] sm:$0xff]   ;;  %v682_v0 = vld [vmem:[#allocation2 + $0x88] sm:$0xff]   ;;  %608 = vmatprep.mubr.bf16.mxu1 %v693_v60 }
  0x1e   :  { %618 = vmatprep.subr.bf16.mxu0 %v673_v4  ;;  %597 = vmatpush3.bf16.msra.mxu1 %v681_v15  ;;  %v210_v42 = vor.u32 %v209_v35, %v206_v31  ;;  %v220_v45 = vor.u32 %v219_v37, %v215_v36  ;;  %v353_v63 = vld [vmem:[%s872_s0] sm:$0xe]  ;;  %v684_v5 = vld [vmem:[#allocation2 + $0x90] sm:$0xff]   ;;  %v686_v7 = vld [vmem:[#allocation2 + $0x98] sm:$0xff]   ;;  %v373_v10 = vrot.slane %v804_v22, 5 }
  0x1f   :  { %v192_v40 = vsel %vm814_vm2, %v187_v33, %v191_v18  ;;  %v202_v41 = vsel %vm814_vm2, %v197_v34, %v201_v21  ;;  %598 = vmatprep.subr.bf16.mxu1 %v683_v39  ;;  %v550_v1 = vrot.slane %v353_v63, 9  ;;  %v370_v2 = vsel %vm826_vm5, %v368_v59, %v369_v54  ;;  %v694_v6 = vld [vmem:[%s872_s0 + $0xc] sm:$0xff]   ;;  %v688_v8 = vld [vmem:[#allocation2 + $0xa0] sm:$0xff]   ;;  %v690_v9 = vld [vmem:[#allocation2 + $0xa8] sm:$0xff]  }
  0x20   :  { %v540_v44 = vcombine.low %v192_v40, %v202_v41  ;;  %v211_v47 = vrot.slane %v210_v42, 4  ;;  %v221_v49 = vrot.slane %v220_v45, 4  ;;  %v692_v11 = vld [vmem:[#allocation2 + $0xb0] sm:$0xff]   ;;  %v375_v15 = vrot.slane %v373_v10, 4  ;;  %v695_v16 = vld [vmem:[#allocation2 + $0xb8] sm:$0xff]  }
  0x21   :  { %619 = vmatpush3.bf16.msra.mxu0 %v673_v4  ;;  %v367_v3 = vsel %vm826_vm5, %v550_v1, %v366_v52  ;;  %v354_v12 = vld [vmem:[%s872_s0 + $0xc] sm:$0xe]  ;;  %v529_v24 = vld [vmem:[%s874_s2] ss:$0 sm:$0xff]  ;;  %s718_s2 = scalar_lea.vmem %s518_s20, 512 }
  0x22   :  { %620 = vmatprep.subr.bf16.mxu0 %v674_v13  ;;  %628 = vmatprep.mubr.bf16.mxu0 %v540_v44  ;;  %v216_v55 = vsel %vm814_vm2, %v211_v47, %v215_v36  ;;  %v226_v56 = vsel %vm814_vm2, %v221_v49, %v225_v48  ;;  %v552_v4 = vcombine.low %v367_v3, %v370_v2  ;;  %v551_v14 = vrot.slane %v354_v12, 9  ;;  %p719_p8 = scmp.ne.s32.totalorder %s518_s20, %s718_s2  ;;  %p724_p10 = scmp.lt.s32.totalorder %s718_s2, %s718_s2 }
  0x23   :  { %599 = vmatpush3.bf16.msra.mxu1 %v683_v39  ;;  %v541_v61 = vcombine.low %v216_v55, %v226_v56 }
  0x24   :  { %600 = vmatprep.subr.bf16.mxu1 %v685_v46  ;;  %v374_v17 = vsel %vm826_vm5, %v551_v14, %v373_v10  ;;  %p725_p11 = por %p724_p10, %p723_p9 }
  0x25   :  { %621 = vmatpush3.bf16.msra.mxu0 %v674_v13  ;;  %v376_v13 = vrot.slane %v809_v23, 5 }
  0x26   :  { %622 = vmatprep.subr.bf16.mxu0 %v675_v29  ;;  %p726_p12 = pnand %p725_p11, %p719_p8 }
  0x27   :  { %601 = vmatpush3.bf16.msra.mxu1 %v685_v46  ;;  %v377_v18 = vsel %vm826_vm5, %v375_v15, %v376_v13 }
  0x28   :  { %602 = vmatprep.subr.bf16.mxu1 %v687_v50  ;;  %v553_v19 = vcombine.low %v374_v17, %v377_v18 }
  0x29   :  { %623 = vmatpush3.bf16.msra.mxu0 %v675_v29 }
  0x2a   :  { %624 = vmatprep.subr.bf16.mxu0 %v676_v43 }
  0x2b   :  { %603 = vmatpush3.bf16.msra.mxu1 %v687_v50 }
  0x2c   :  { %604 = vmatprep.subr.bf16.mxu1 %v689_v57 }
  0x2d   :  { %625 = vmatpush3.bf16.msra.mxu0 %v676_v43 }
  0x2e   :  { %626 = vmatprep.subr.bf16.mxu0 %v678_v51 }
  0x2f   :  { %605 = vmatpush3.bf16.msra.mxu1 %v689_v57 }
  0x30   :  { %606 = vmatprep.subr.bf16.mxu1 %v691_v62 }
  0x31   :  { %627 = vmatpush3.bf16.msra.mxu0 %v678_v51 }
  0x32   :  { %632 = vmatprep.subr.bf16.mxu0 %v680_v58 }
  0x33   :  { %607 = vmatpush3.bf16.msra.mxu1 %v691_v62 }
  0x34   :  { %629 = vmatmul.mubr.bf16.vlgmr.msra.gmra.mrb[0].mxu0 %v541_v61 }
  0x35   :  { %633 = vmatpush3.bf16.msra.mxu0 %v680_v58  ;;  %648 = vmatprep.mubr.bf16.mxu0 %v552_v4 }
  0x36   :  { %634 = vmatprep.subr.bf16.mxu0 %v682_v0  ;;  %609 = vmatmul.mubr.bf16.vlgmr.msra.gmra.mrb[0].mxu1 %v694_v6 }
  0x39   :  { %635 = vmatpush3.bf16.msra.mxu0 %v682_v0 }
  0x3a   :  { %636 = vmatprep.subr.bf16.mxu0 %v684_v5 }
  0x3d   :  { %637 = vmatpush3.bf16.msra.mxu0 %v684_v5 }
  0x3e   :  { %638 = vmatprep.subr.bf16.mxu0 %v686_v7 }
  0x41   :  { %639 = vmatpush3.bf16.msra.mxu0 %v686_v7 }
  0x42   :  { %640 = vmatprep.subr.bf16.mxu0 %v688_v8 }
  0x45   :  { %641 = vmatpush3.bf16.msra.mxu0 %v688_v8 }
  0x46   :  { %642 = vmatprep.subr.bf16.mxu0 %v690_v9 }
  0x49   :  { %643 = vmatpush3.bf16.msra.mxu0 %v690_v9 }
  0x4a   :  { %644 = vmatprep.subr.bf16.mxu0 %v692_v11 }
  0x4d   :  { %645 = vmatpush3.bf16.msra.mxu0 %v692_v11 }
  0x4e   :  { %646 = vmatprep.subr.bf16.mxu0 %v695_v16 }
  0x51   :  { %647 = vmatpush3.bf16.msra.mxu0 %v695_v16 }
  0x54   :  { %649 = vmatmul.mubr.bf16.vlgmr.msra.gmra.mrb[0].mxu0 %v553_v19 }
 0x109   :  { %v610_v20 = vpop.f32.mrb[0].mxu1 }
 0x10a   :  { %v151_v21 = vpop.f32.mrb[1].mxu1  ;;  %v168_v25 = vadd.f32 %v610_v20, %v529_v24 }
 0x10b   :  { %v611_v22 = vpop.f32.mrb[2].mxu1  ;;  %v166_v26 = vadd.f32 %v529_v24, %v151_v21 }
 0x10c   :  { %v154_v23 = vpop.f32.mrb[3].mxu1  ;;  %v169_v28 = vadd.f32 %v611_v22, %v529_v24 }
 0x10d   :  { %v167_v31 = vadd.f32 %v529_v24, %v154_v23 }
 0x127   :  { %v650_v27 = vpop.f32.mrb[0].mxu0 }
 0x128   :  { %v653_v29 = vadd.f32 %v650_v27, %v168_v25  ;;  %v485_v30 = vpop.f32.mrb[1].mxu0 }
 0x129   :  { %v655_v32 = vadd.f32 %v485_v30, %v166_v26  ;;  %v651_v33 = vpop.f32.mrb[2].mxu0 }
 0x12a   :  { %v506_v34 = vmax.f32 %v653_v29, 0.0  ;;  %v657_v35 = vadd.f32 %v651_v33, %v169_v28  ;;  %v488_v36 = vpop.f32.mrb[3].mxu0 }
 0x12b   :  { %v504_v37 = vmax.f32 %v655_v32, 0.0  ;;  %v659_v38 = vadd.f32 %v488_v36, %v167_v31 }
 0x12c   :  { %510 = vst [vmem:[#allocation5 + $0x10] sm:$0xff] %v506_v34  ;;  %v507_v39 = vmax.f32 %v657_v35, 0.0 }
 0x12d   :  { %508 = vst [vmem:[#allocation5] sm:$0xff] %v504_v37  ;;  %v505_v40 = vmax.f32 %v659_v38, 0.0 }
 0x12e   :  { %511 = vst [vmem:[#allocation5 + $0x18] sm:$0xff] %v507_v39 }
 0x12f   :  { %509 = vst [vmem:[#allocation5 + $0x8] sm:$0xff] %v505_v40 }
 0x130   :  { %729 = shalt.err (!%p726_p12)
}
 0x131   :  { %s730_s23 = scalar_lea.hbm %s875_s3, 512 }
 0x132   :  { %p731_p13 = scmp.ne.s32.totalorder %s875_s3, %s730_s23  ;;  %p734_p0 = scmp.lt.u32.totalorder %s730_s23, %s875_s3 }
 0x134   :  { %p736_p1 = pnand %p734_p0, %p731_p13 }
 0x136   :  { %739 = shalt.err (!%p736_p1)
}
 0x137   :  { %s748_s1 = smov 128   ;;  %s749_s28 = smov 8  }
 0x138   :  { %523 = dma.vmem_to_hbm [thread:$0]  %s518_s20, 512, %s875_s3, [#allocation4], %s748_s1, %s748_s1, %s749_s28  }
 0x139   :  { %742 = dma.done.wait [#allocation4], 512  }
 0x13a   :  { %743 = vsyncadd [#allocation4], 4294966784 }
 0x13b   :  { %527 = vsyncpa [#allocation3], 1 }
 0x13c   :  { %528 = vsyncpa [#allocation4], 1 }

// kernel: tpu_custom_call.1
= control target key start
LH: loop header
LB: loop body
LE: loop exit
PB: predicated region body
PF: predicated region fallthrough
CT: control target
= control target key end

     0   :  { %8 = vsyncpa [#allocation3], 0  ;;  %s872_s0 = inlined_call_operand.vmem [shape: bf16[2,18,128], index: 0, kind: input, shape index: {}]   ;;  %s873_s1 = inlined_call_operand.hbm [shape: bf16[3,128,128], index: 1, kind: input, shape index: {}]   ;;  %s874_s2 = inlined_call_operand.vmem [shape: f32[1,128], index: 2, kind: input, shape index: {}]   ;;  %s875_s3 = inlined_call_operand.hbm [shape: f32[2,16,128], index: 3, kind: output, shape index: {}]  }
   0x1   :  { %9 = vsyncpa [#allocation4], 0  ;;  %s744_s12 = smov [#allocation2]   ;;  %s696_s16 = scalar_lea.hbm %s873_s1, 3072 }
   0x2   :  { %s17_s13 = sshll.u32 %s744_s12, 4  ;;  %p697_p0 = scmp.ne.s32.totalorder %s873_s1, %s696_s16  ;;  %s18_s13 = int_to_ptr.vmem [resolvable:$true] %s17_s13 }
   0x3   :  { %p700_p1 = scmp.lt.u32.totalorder %s696_s16, %s873_s1 }
   0x5   :  { %p702_p2 = pnand %p700_p1, %p697_p0 }
   0x7   :  { %705 = shalt.err (!%p702_p2)
}
   0x8   :  { %s706_s21 = scalar_lea.vmem %s18_s13, 3072  ;;  %p711_p4 = scmp.lt.s32.totalorder %s18_s13, %s18_s13 }
   0x9   :  { %p707_p3 = scmp.ne.s32.totalorder %s18_s13, %s706_s21  ;;  %p712_p5 = scmp.lt.s32.totalorder %s706_s21, %s706_s21 }
   0xb   :  { %p713_p6 = por %p712_p5, %p711_p4 }
   0xd   :  { %p714_p7 = pnand %p713_p6, %p707_p3 }
   0xf   :  { %717 = shalt.err (!%p714_p7)
}
  0x10   :  { %s745_s22 = smov 64   ;;  %s746_s23 = smov 4  }
  0x11   :  { %23 = dma.hbm_to_vmem [thread:$0]  %s873_s1, 3072, %s18_s13, [#allocation3], %s745_s22, %s745_s22, %s746_s23  }
  0x12   :  { %740 = dma.done.wait [#allocation3], 3072  }
  0x13   :  { %741 = vsyncadd [#allocation3], 4294964224  ;;  %v670_v0 = vld [vmem:[#allocation2 + $0x40] sm:$0xff]   ;;  %v671_v1 = vld [vmem:[#allocation2 + $0x48] sm:$0xff]   ;;  %vm176_vm0 = vsmask.f32 3328 }
  0x14   :  { %612 = vmatprep.subr.bf16.mxu0 %v670_v0  ;;  %v672_v2 = vld [vmem:[#allocation2 + $0x50] sm:$0xff]   ;;  %vm177_vm1 = vsmask.f32 7440  ;;  %v677_v3 = vld [vmem:[#allocation2] sm:$0xff]   ;;  %v673_v4 = vld [vmem:[#allocation2 + $0x58] sm:$0xff]   ;;  %vm361_vm3 = vcmask 1042432  }
  0x15   :  { %613 = vmatpush3.bf16.msra.mxu0 %v670_v0  ;;  %592 = vmatprep.subr.bf16.mxu1 %v677_v3  ;;  %v679_v5 = vld [vmem:[#allocation2 + $0x8] sm:$0xff]   ;;  %v793_v8 = vld [vmem:[%s872_s0 + $0x8] sm:$0x1]  ;;  %v674_v13 = vld [vmem:[#allocation2 + $0x60] sm:$0xff]   ;;  %vm362_vm4 = vcmask 1046532   ;;  %s747_s19 = smov [#allocation5]  }
  0x16   :  { %614 = vmatprep.subr.bf16.mxu0 %v671_v1  ;;  %593 = vmatpush3.bf16.msra.mxu1 %v677_v3  ;;  %v170_v6 = vld [vmem:[%s872_s0] sm:$0xf]  ;;  %v788_v7 = vld [vmem:[%s872_s0 + $0x4] sm:$0xf]  ;;  %v199_v14 = vshll.u32 %v793_v8, 16  ;;  %v681_v15 = vld [vmem:[#allocation2 + $0x10] sm:$0xff]  }
  0x17   :  { %594 = vmatprep.subr.bf16.mxu1 %v679_v5  ;;  %v180_v9 = vshrl.u32 %v170_v6, 16  ;;  %v183_v10 = vshll.u32 %v170_v6, 16  ;;  %v189_v11 = vshll.u32 %v788_v7, 16  ;;  %v193_v12 = vshrl.u32 %v788_v7, 16  ;;  %v173_v20 = vld [vmem:[%s872_s0 + $0xc] sm:$0xf]  ;;  %vm814_vm2 = vmor %vm176_vm0, %vm177_vm1 }
  0x18   :  { %v201_v21 = vrot.slane %v199_v14, 5  ;;  %v804_v22 = vld [vmem:[%s872_s0 + $0x10] sm:$0xf]  ;;  %v809_v23 = vld [vmem:[%s872_s0 + $0x14] sm:$0x1]  ;;  %v204_v24 = vshrl.u32 %v173_v20, 16  ;;  %vm826_vm5 = vmor %vm361_vm3, %vm362_vm4 }
  0x19   :  { %615 = vmatpush3.bf16.msra.mxu0 %v671_v1  ;;  %v182_v16 = vrot.slane %v180_v9, 4  ;;  %v185_v17 = vrot.slane %v183_v10, 5  ;;  %v191_v18 = vrot.slane %v189_v11, 5  ;;  %v195_v19 = vrot.slane %v193_v12, 4  ;;  %v675_v29 = vld [vmem:[#allocation2 + $0x68] sm:$0xff]   ;;  %v683_v39 = vld [vmem:[#allocation2 + $0x18] sm:$0xff]  }
  0x1a   :  { %616 = vmatprep.subr.bf16.mxu0 %v672_v2  ;;  %595 = vmatpush3.bf16.msra.mxu1 %v679_v5  ;;  %v207_v27 = vshll.u32 %v173_v20, 16  ;;  %v213_v28 = vshll.u32 %v804_v22, 16  ;;  %v206_v31 = vrot.slane %v204_v24, 4  ;;  %v217_v32 = vshrl.u32 %v804_v22, 16  ;;  %v676_v43 = vld [vmem:[#allocation2 + $0x70] sm:$0xff]   ;;  %v685_v46 = vld [vmem:[#allocation2 + $0x20] sm:$0xff]  }
  0x1b   :  { %v186_v25 = vor.u32 %v185_v17, %v182_v16  ;;  %v196_v26 = vor.u32 %v195_v19, %v191_v18  ;;  %596 = vmatprep.subr.bf16.mxu1 %v681_v15  ;;  %v223_v38 = vshll.u32 %v809_v23, 16  ;;  %v687_v50 = vld [vmem:[#allocation2 + $0x28] sm:$0xff]   ;;  %v678_v51 = vld [vmem:[#allocation2 + $0x78] sm:$0xff]   ;;  %v366_v52 = vrot.slane %v788_v7, 5  ;;  %v689_v57 = vld [vmem:[#allocation2 + $0x30] sm:$0xff]   ;;  %s517_s20 = sshll.u32 %s747_s19, 4  ;;  %s518_s20 = int_to_ptr.vmem [resolvable:$true] %s517_s20 }
  0x1c   :  { %v209_v35 = vrot.slane %v207_v27, 5  ;;  %v215_v36 = vrot.slane %v213_v28, 5  ;;  %v219_v37 = vrot.slane %v217_v32, 4  ;;  %v369_v54 = vrot.slane %v793_v8, 5  ;;  %v680_v58 = vld [vmem:[#allocation2 + $0x80] sm:$0xff]   ;;  %v693_v60 = vld [vmem:[%s872_s0] sm:$0xff]   ;;  %p723_p9 = scmp.lt.s32.totalorder %s518_s20, %s518_s20 }
  0x1d   :  { %617 = vmatpush3.bf16.msra.mxu0 %v672_v2  ;;  %v187_v33 = vrot.slane %v186_v25, 4  ;;  %v197_v34 = vrot.slane %v196_v26, 4  ;;  %v225_v48 = vrot.slane %v223_v38, 5  ;;  %v368_v59 = vrot.slane %v366_v52, 4  ;;  %v691_v62 = vld [vmem:[#allocation2 + $0x38] sm:$0xff]   ;;  %v682_v0 = vld [vmem:[#allocation2 + $0x88] sm:$0xff]   ;;  %608 = vmatprep.mubr.bf16.mxu1 %v693_v60 }
  0x1e   :  { %618 = vmatprep.subr.bf16.mxu0 %v673_v4  ;;  %597 = vmatpush3.bf16.msra.mxu1 %v681_v15  ;;  %v210_v42 = vor.u32 %v209_v35, %v206_v31  ;;  %v220_v45 = vor.u32 %v219_v37, %v215_v36  ;;  %v353_v63 = vld [vmem:[%s872_s0] sm:$0xe]  ;;  %v684_v5 = vld [vmem:[#allocation2 + $0x90] sm:$0xff]   ;;  %v686_v7 = vld [vmem:[#allocation2 + $0x98] sm:$0xff]   ;;  %v373_v10 = vrot.slane %v804_v22, 5 }
  0x1f   :  { %v192_v40 = vsel %vm814_vm2, %v187_v33, %v191_v18  ;;  %v202_v41 = vsel %vm814_vm2, %v197_v34, %v201_v21  ;;  %598 = vmatprep.subr.bf16.mxu1 %v683_v39  ;;  %v550_v1 = vrot.slane %v353_v63, 9  ;;  %v370_v2 = vsel %vm826_vm5, %v368_v59, %v369_v54  ;;  %v694_v6 = vld [vmem:[%s872_s0 + $0xc] sm:$0xff]   ;;  %v688_v8 = vld [vmem:[#allocation2 + $0xa0] sm:$0xff]   ;;  %v690_v9 = vld [vmem:[#allocation2 + $0xa8] sm:$0xff]  }
  0x20   :  { %v540_v44 = vcombine.low %v192_v40, %v202_v41  ;;  %v211_v47 = vrot.slane %v210_v42, 4  ;;  %v221_v49 = vrot.slane %v220_v45, 4  ;;  %v692_v11 = vld [vmem:[#allocation2 + $0xb0] sm:$0xff]   ;;  %v375_v15 = vrot.slane %v373_v10, 4  ;;  %v695_v16 = vld [vmem:[#allocation2 + $0xb8] sm:$0xff]  }
  0x21   :  { %619 = vmatpush3.bf16.msra.mxu0 %v673_v4  ;;  %v367_v3 = vsel %vm826_vm5, %v550_v1, %v366_v52  ;;  %v354_v12 = vld [vmem:[%s872_s0 + $0xc] sm:$0xe]  ;;  %v529_v24 = vld [vmem:[%s874_s2] ss:$0 sm:$0xff]  ;;  %s718_s2 = scalar_lea.vmem %s518_s20, 512 }
  0x22   :  { %620 = vmatprep.subr.bf16.mxu0 %v674_v13  ;;  %628 = vmatprep.mubr.bf16.mxu0 %v540_v44  ;;  %v216_v55 = vsel %vm814_vm2, %v211_v47, %v215_v36  ;;  %v226_v56 = vsel %vm814_vm2, %v221_v49, %v225_v48  ;;  %v552_v4 = vcombine.low %v367_v3, %v370_v2  ;;  %v551_v14 = vrot.slane %v354_v12, 9  ;;  %p719_p8 = scmp.ne.s32.totalorder %s518_s20, %s718_s2  ;;  %p724_p10 = scmp.lt.s32.totalorder %s718_s2, %s718_s2 }
  0x23   :  { %599 = vmatpush3.bf16.msra.mxu1 %v683_v39  ;;  %v541_v61 = vcombine.low %v216_v55, %v226_v56 }
  0x24   :  { %600 = vmatprep.subr.bf16.mxu1 %v685_v46  ;;  %v374_v17 = vsel %vm826_vm5, %v551_v14, %v373_v10  ;;  %p725_p11 = por %p724_p10, %p723_p9 }
  0x25   :  { %621 = vmatpush3.bf16.msra.mxu0 %v674_v13  ;;  %v376_v13 = vrot.slane %v809_v23, 5 }
  0x26   :  { %622 = vmatprep.subr.bf16.mxu0 %v675_v29  ;;  %p726_p12 = pnand %p725_p11, %p719_p8 }
  0x27   :  { %601 = vmatpush3.bf16.msra.mxu1 %v685_v46  ;;  %v377_v18 = vsel %vm826_vm5, %v375_v15, %v376_v13 }
  0x28   :  { %602 = vmatprep.subr.bf16.mxu1 %v687_v50  ;;  %v553_v19 = vcombine.low %v374_v17, %v377_v18 }
  0x29   :  { %623 = vmatpush3.bf16.msra.mxu0 %v675_v29 }
  0x2a   :  { %624 = vmatprep.subr.bf16.mxu0 %v676_v43 }
  0x2b   :  { %603 = vmatpush3.bf16.msra.mxu1 %v687_v50 }
  0x2c   :  { %604 = vmatprep.subr.bf16.mxu1 %v689_v57 }
  0x2d   :  { %625 = vmatpush3.bf16.msra.mxu0 %v676_v43 }
  0x2e   :  { %626 = vmatprep.subr.bf16.mxu0 %v678_v51 }
  0x2f   :  { %605 = vmatpush3.bf16.msra.mxu1 %v689_v57 }
  0x30   :  { %606 = vmatprep.subr.bf16.mxu1 %v691_v62 }
  0x31   :  { %627 = vmatpush3.bf16.msra.mxu0 %v678_v51 }
  0x32   :  { %632 = vmatprep.subr.bf16.mxu0 %v680_v58 }
  0x33   :  { %607 = vmatpush3.bf16.msra.mxu1 %v691_v62 }
  0x34   :  { %629 = vmatmul.mubr.bf16.vlgmr.msra.gmra.mrb[0].mxu0 %v541_v61 }
  0x35   :  { %633 = vmatpush3.bf16.msra.mxu0 %v680_v58  ;;  %648 = vmatprep.mubr.bf16.mxu0 %v552_v4 }
  0x36   :  { %634 = vmatprep.subr.bf16.mxu0 %v682_v0  ;;  %609 = vmatmul.mubr.bf16.vlgmr.msra.gmra.mrb[0].mxu1 %v694_v6 }
  0x39   :  { %635 = vmatpush3.bf16.msra.mxu0 %v682_v0 }
  0x3a   :  { %636 = vmatprep.subr.bf16.mxu0 %v684_v5 }
  0x3d   :  { %637 = vmatpush3.bf16.msra.mxu0 %v684_v5 }
  0x3e   :  { %638 = vmatprep.subr.bf16.mxu0 %v686_v7 }
  0x41   :  { %639 = vmatpush3.bf16.msra.mxu0 %v686_v7 }
  0x42   :  { %640 = vmatprep.subr.bf16.mxu0 %v688_v8 }
  0x45   :  { %641 = vmatpush3.bf16.msra.mxu0 %v688_v8 }
  0x46   :  { %642 = vmatprep.subr.bf16.mxu0 %v690_v9 }
  0x49   :  { %643 = vmatpush3.bf16.msra.mxu0 %v690_v9 }
  0x4a   :  { %644 = vmatprep.subr.bf16.mxu0 %v692_v11 }
  0x4d   :  { %645 = vmatpush3.bf16.msra.mxu0 %v692_v11 }
  0x4e   :  { %646 = vmatprep.subr.bf16.mxu0 %v695_v16 }
  0x51   :  { %647 = vmatpush3.bf16.msra.mxu0 %v695_v16 }
  0x54   :  { %649 = vmatmul.mubr.bf16.vlgmr.msra.gmra.mrb[0].mxu0 %v553_v19 }
 0x109   :  { %v610_v20 = vpop.f32.mrb[0].mxu1 }
 0x10a   :  { %v151_v21 = vpop.f32.mrb[1].mxu1  ;;  %v168_v25 = vadd.f32 %v610_v20, %v529_v24 }
 0x10b   :  { %v611_v22 = vpop.f32.mrb[2].mxu1  ;;  %v166_v26 = vadd.f32 %v529_v24, %v151_v21 }
 0x10c   :  { %v154_v23 = vpop.f32.mrb[3].mxu1  ;;  %v169_v28 = vadd.f32 %v611_v22, %v529_v24 }
 0x10d   :  { %v167_v31 = vadd.f32 %v529_v24, %v154_v23 }
 0x127   :  { %v650_v27 = vpop.f32.mrb[0].mxu0 }
 0x128   :  { %v653_v29 = vadd.f32 %v650_v27, %v168_v25  ;;  %v485_v30 = vpop.f32.mrb[1].mxu0 }
 0x129   :  { %v655_v32 = vadd.f32 %v485_v30, %v166_v26  ;;  %v651_v33 = vpop.f32.mrb[2].mxu0 }
 0x12a   :  { %v506_v34 = vmax.f32 %v653_v29, 0.0  ;;  %v657_v35 = vadd.f32 %v651_v33, %v169_v28  ;;  %v488_v36 = vpop.f32.mrb[3].mxu0 }
 0x12b   :  { %v504_v37 = vmax.f32 %v655_v32, 0.0  ;;  %v659_v38 = vadd.f32 %v488_v36, %v167_v31 }
 0x12c   :  { %510 = vst [vmem:[#allocation5 + $0x10] sm:$0xff] %v506_v34  ;;  %v507_v39 = vmax.f32 %v657_v35, 0.0 }
 0x12d   :  { %508 = vst [vmem:[#allocation5] sm:$0xff] %v504_v37  ;;  %v505_v40 = vmax.f32 %v659_v38, 0.0 }
 0x12e   :  { %511 = vst [vmem:[#allocation5 + $0x18] sm:$0xff] %v507_v39 }
 0x12f   :  { %509 = vst [vmem:[#allocation5 + $0x8] sm:$0xff] %v505_v40 }
 0x130   :  { %729 = shalt.err (!%p726_p12)
}
 0x131   :  { %s730_s23 = scalar_lea.hbm %s875_s3, 512 }
 0x132   :  { %p731_p13 = scmp.ne.s32.totalorder %s875_s3, %s730_s23  ;;  %p734_p0 = scmp.lt.u32.totalorder %s730_s23, %s875_s3 }
 0x134   :  { %p736_p1 = pnand %p734_p0, %p731_p13 }
 0x136   :  { %739 = shalt.err (!%p736_p1)
}
 0x137   :  { %s748_s1 = smov 128   ;;  %s749_s28 = smov 8  }
 0x138   :  { %523 = dma.vmem_to_hbm [thread:$0]  %s518_s20, 512, %s875_s3, [#allocation4], %s748_s1, %s748_s1, %s749_s28  }
 0x139   :  { %742 = dma.done.wait [#allocation4], 512  }
 0x13a   :  { %743 = vsyncadd [#allocation4], 4294966784 }
 0x13b   :  { %527 = vsyncpa [#allocation3], 1 }
 0x13c   :  { %528 = vsyncpa [#allocation4], 1 }

</bundles_post_ra>
